<compile_context>
chip_gen: v6e
topology: v6e:2x2x1
jax: 0.10.0
libtpu: 0.0.40
codegen_flags: <defaults>
</compile_context>

<pallas_src>
import functools
import math

import jax
import jax.numpy as jnp
from jax.experimental import pallas as pl
from jax.experimental.pallas import tpu as pltpu

VMEM_LIMIT_BYTES = 32 * 1024 * 1024  # explicit scoped-VMEM budget (safe on v5e/v6e/v7x)


def _pick_tile(dim, target, multiple):
    """Largest tile <= target that divides dim and is a multiple of `multiple`; else dim."""
    if dim <= target:
        return dim
    t = target - (target % multiple)
    while t >= multiple:
        if dim % t == 0:
            return t
        t -= multiple
    return dim


# ---------------------------------------------------------------------------
# Kernel 1: LayerNorm(att_norm) + Q/K/V projections, head-major bf16 outputs.
# ---------------------------------------------------------------------------
def ln_qkv_kernel(x_ref, ln1_g_ref, ln1_b_ref,
                  wq_ref, bq_ref, wk_ref, bk_ref, wv_ref, bv_ref,
                  q_ref, k_ref, v_ref, *, num_heads, head_dim):
    x = x_ref[0].astype(jnp.float32)                               # (tq, D)
    tq = x.shape[0]

    mu = jnp.mean(x, axis=-1, keepdims=True)
    var = jnp.mean((x - mu) ** 2, axis=-1, keepdims=True)
    xn = (x - mu) * jax.lax.rsqrt(var + 1e-6)
    xn = xn * ln1_g_ref[0] + ln1_b_ref[0]
    xn_c = xn.astype(wq_ref.dtype)                                 # bf16 MXU operand

    def proj(w_ref, b_ref, o_ref):
        p = jnp.dot(xn_c, w_ref[...], preferred_element_type=jnp.float32) + b_ref[0]
        p = p.reshape(tq, num_heads, head_dim)                     # split heads (f32 relayout)
        p = jnp.transpose(p, (1, 0, 2))                            # (H, tq, Dh)
        o_ref[0] = p.astype(o_ref.dtype)

    proj(wq_ref, bq_ref, q_ref)
    proj(wk_ref, bk_ref, k_ref)
    proj(wv_ref, bv_ref, v_ref)


def _ln_qkv(x, params_c, *, num_heads, head_dim, q_tile, compute_dtype):
    B, L, D = x.shape
    nqt = L // q_tile
    kernel = functools.partial(ln_qkv_kernel, num_heads=num_heads, head_dim=head_dim)

    def full(arr):
        return pl.BlockSpec(arr.shape, lambda b, qt, _nd=arr.ndim: (0,) * _nd)

    weight_args = [params_c['ln1_g'], params_c['ln1_b'],
                   params_c['wq'], params_c['bq'],
                   params_c['wk'], params_c['bk'],
                   params_c['wv'], params_c['bv']]
    in_specs = [pl.BlockSpec((1, q_tile, D), lambda b, qt: (b, qt, 0))]
    in_specs += [full(a) for a in weight_args]

    head_shape = jax.ShapeDtypeStruct((B, num_heads, L, head_dim), compute_dtype)
    head_spec = pl.BlockSpec((1, num_heads, q_tile, head_dim), lambda b, qt: (b, 0, qt, 0))

    return pl.pallas_call(
        kernel,
        out_shape=(head_shape, head_shape, head_shape),
        grid_spec=pltpu.PrefetchScalarGridSpec(
            num_scalar_prefetch=0,
            grid=(B, nqt),
            in_specs=in_specs,
            out_specs=(head_spec, head_spec, head_spec)),
        compiler_params=pltpu.CompilerParams(
            dimension_semantics=("parallel", "parallel"),
            vmem_limit_bytes=VMEM_LIMIT_BYTES),
    )(x, *weight_args)


# ---------------------------------------------------------------------------
# Kernel 2: per-(batch, head, q-tile) attention. Optional weights output.
# ---------------------------------------------------------------------------
def mha_kernel(q_ref, k_ref, v_ref, *out_refs, scale, with_weights):
    ctx_ref = out_refs[0]
    q = q_ref[0, 0]                                                # (tq, Dh) bf16
    k = k_ref[0, 0]                                                # (L,  Dh) bf16
    v = v_ref[0, 0]                                                # (L,  Dh) bf16

    # Q . K^T as a lane-dense 2-D NT matmul, f32 accumulation.
    s = jax.lax.dot_general(q, k, (((1,), (1,)), ((), ())),
                            preferred_element_type=jnp.float32)    # (tq, L)
    s = s * scale

    m = jnp.max(s, axis=-1, keepdims=True)
    e = jnp.exp(s - m)
    p = e * pl.reciprocal(jnp.sum(e, axis=-1, keepdims=True), approx=True)

    if with_weights:
        out_refs[1][0, 0] = p.astype(out_refs[1].dtype)

    ctx = jnp.dot(p.astype(v.dtype), v, preferred_element_type=jnp.float32)
    ctx_ref[0, 0] = ctx.astype(ctx_ref.dtype)


def _mha(q, k, v, *, q_tile, return_weights, attw_dtype, compute_dtype):
    B, H, L, Dh = q.shape
    nqt = L // q_tile
    kernel = functools.partial(mha_kernel, scale=1.0 / math.sqrt(Dh),
                               with_weights=return_weights)

    q_spec = pl.BlockSpec((1, 1, q_tile, Dh), lambda b, h, qt: (b, h, qt, 0))
    kv_spec = pl.BlockSpec((1, 1, L, Dh), lambda b, h, qt: (b, h, 0, 0))

    out_shape = [jax.ShapeDtypeStruct((B, H, L, Dh), compute_dtype)]
    out_specs = [pl.BlockSpec((1, 1, q_tile, Dh), lambda b, h, qt: (b, h, qt, 0))]
    if return_weights:
        out_shape.append(jax.ShapeDtypeStruct((B, H, L, L), attw_dtype))
        out_specs.append(pl.BlockSpec((1, 1, q_tile, L), lambda b, h, qt: (b, h, qt, 0)))

    res = pl.pallas_call(
        kernel,
        out_shape=tuple(out_shape),
        grid_spec=pltpu.PrefetchScalarGridSpec(
            num_scalar_prefetch=0,
            grid=(B, H, nqt),
            in_specs=[q_spec, kv_spec, kv_spec],
            out_specs=tuple(out_specs)),
        compiler_params=pltpu.CompilerParams(
            dimension_semantics=("parallel", "parallel", "parallel"),
            vmem_limit_bytes=VMEM_LIMIT_BYTES),
    )(q, k, v)

    if return_weights:
        return res[0], res[1]
    return res[0], None


# ---------------------------------------------------------------------------
# Kernel 3: O-projection + residual + LN2 + F-tiled FFN (+ residual).
# ---------------------------------------------------------------------------
def proj_ffn_kernel(x_ref, ctx_ref, wo_ref, bo_ref, ln2_g_ref, ln2_b_ref,
                    w1_ref, b1_ref, w2_ref, b2_ref, out_ref,
                    x1_s, xn2_s, acc_s):
    ft = pl.program_id(2)

    @pl.when(ft == 0)
    def _init():
        x = x_ref[0].astype(jnp.float32)                           # (tq, D)
        ctx = ctx_ref[0].astype(jnp.float32)                       # (H, tq, Dh)
        H, tq, Dh = ctx.shape
        # concat heads: (H, tq, Dh) -> (tq, H*Dh); relayout done in f32 (tile-sized only).
        ctx2d = jnp.transpose(ctx, (1, 0, 2)).reshape(tq, H * Dh)
        att = jnp.dot(ctx2d.astype(wo_ref.dtype), wo_ref[...],
                      preferred_element_type=jnp.float32) + bo_ref[0]
        x1 = x + att                                               # residual #1
        x1_s[...] = x1

        mu = jnp.mean(x1, axis=-1, keepdims=True)
        var = jnp.mean((x1 - mu) ** 2, axis=-1, keepdims=True)
        xn2 = (x1 - mu) * jax.lax.rsqrt(var + 1e-6)
        xn2 = xn2 * ln2_g_ref[0] + ln2_b_ref[0]
        xn2_s[...] = xn2.astype(xn2_s.dtype)
        acc_s[...] = jnp.zeros_like(acc_s)

    # fc1 slab -> exact GELU -> fc2 slab, accumulated over F tiles.
    h = jnp.dot(xn2_s[...], w1_ref[...],
                preferred_element_type=jnp.float32) + b1_ref[0]    # (tq, tf)
    h = 0.5 * h * (1.0 + jax.lax.erf(h * (1.0 / math.sqrt(2.0))))
    acc_s[...] += jnp.dot(h.astype(w2_ref.dtype), w2_ref[...],
                          preferred_element_type=jnp.float32)

    @pl.when(ft == pl.num_programs(2) - 1)
    def _finalize():
        out_ref[0] = (x1_s[...] + acc_s[...] + b2_ref[0]).astype(out_ref.dtype)


def _proj_ffn(x, ctx, params_c, *, q_tile, f_tile, compute_dtype):
    B, L, D = x.shape
    H, Dh = ctx.shape[1], ctx.shape[3]
    F = params_c['w1'].shape[1]
    nqt, nft = L // q_tile, F // f_tile

    def full(arr):
        return pl.BlockSpec(arr.shape, lambda b, qt, ft, _nd=arr.ndim: (0,) * _nd)

    in_specs = [
        pl.BlockSpec((1, q_tile, D), lambda b, qt, ft: (b, qt, 0)),          # x (residual)
        pl.BlockSpec((1, H, q_tile, Dh), lambda b, qt, ft: (b, 0, qt, 0)),   # ctx
        full(params_c['wo']), full(params_c['bo']),
        full(params_c['ln2_g']), full(params_c['ln2_b']),
        pl.BlockSpec((D, f_tile), lambda b, qt, ft: (0, ft)),                # w1 slab
        pl.BlockSpec((1, f_tile), lambda b, qt, ft: (0, ft)),                # b1 slab
        pl.BlockSpec((f_tile, D), lambda b, qt, ft: (ft, 0)),                # w2 slab
        full(params_c['b2']),
    ]
    out_specs = pl.BlockSpec((1, q_tile, D), lambda b, qt, ft: (b, qt, 0))

    return pl.pallas_call(
        proj_ffn_kernel,
        out_shape=jax.ShapeDtypeStruct((B, L, D), x.dtype),
        grid_spec=pltpu.PrefetchScalarGridSpec(
            num_scalar_prefetch=0,
            grid=(B, nqt, nft),
            in_specs=in_specs,
            out_specs=out_specs,
            scratch_shapes=[pltpu.VMEM((q_tile, D), jnp.float32),     # x1 (residual)
                            pltpu.VMEM((q_tile, D), compute_dtype),   # xn2 (FFN input)
                            pltpu.VMEM((q_tile, D), jnp.float32)]),   # fc2 accumulator
        compiler_params=pltpu.CompilerParams(
            dimension_semantics=("parallel", "parallel", "arbitrary"),
            vmem_limit_bytes=VMEM_LIMIT_BYTES),
    )(x, ctx, params_c['wo'], params_c['bo'], params_c['ln2_g'], params_c['ln2_b'],
      params_c['w1'], params_c['b1'], params_c['w2'], params_c['b2'])


# ---------------------------------------------------------------------------
# Top-level layer
# ---------------------------------------------------------------------------
def transformer_layer(x, params, *, num_heads, q_tile=256, f_tile=512,
                      return_weights=True, compute_dtype=jnp.bfloat16):
    B, L, D = x.shape
    head_dim = D // num_heads
    F = params['w1'].shape[1]
    tq = _pick_tile(L, q_tile, 8)
    tf = _pick_tile(F, f_tile, 128)

    # MXU operands in bf16; biases and LayerNorm params stay f32.
    params_c = dict(params)
    for name in ('wq', 'wk', 'wv', 'wo', 'w1', 'w2'):
        params_c[name] = params[name].astype(compute_dtype)

    q, k, v = _ln_qkv(x, params_c, num_heads=num_heads, head_dim=head_dim,
                      q_tile=tq, compute_dtype=compute_dtype)
    ctx, attw = _mha(q, k, v, q_tile=tq, return_weights=return_weights,
                     attw_dtype=x.dtype, compute_dtype=compute_dtype)
    out = _proj_ffn(x, ctx, params_c, q_tile=tq, f_tile=tf,
                    compute_dtype=compute_dtype)
    if return_weights:
        return out, attw
    return out


# ---------------------------------------------------------------------------
# Params / reference
# ---------------------------------------------------------------------------
def init_params(key, d_model, dim_feedforward):
    ks = jax.random.split(key, 8)

    def xavier(k, shape):
        fan_in, fan_out = shape
        lim = math.sqrt(6.0 / (fan_in + fan_out))
        return jax.random.uniform(k, shape, jnp.float32, -lim, lim)

    D, F = d_model, dim_feedforward
    return dict(
        wq=xavier(ks[0], (D, D)), bq=jnp.zeros((1, D), jnp.float32),
        wk=xavier(ks[1], (D, D)), bk=jnp.zeros((1, D), jnp.float32),
        wv=xavier(ks[2], (D, D)), bv=jnp.zeros((1, D), jnp.float32),
        wo=xavier(ks[3], (D, D)),
        bo=1e-3 * jax.random.normal(ks[4], (1, D), jnp.float32),
        ln1_g=jnp.ones((1, D), jnp.float32), ln1_b=jnp.zeros((1, D), jnp.float32),
        ln2_g=jnp.ones((1, D), jnp.float32), ln2_b=jnp.zeros((1, D), jnp.float32),
        w1=xavier(ks[5], (D, F)),
        b1=1e-6 * jax.random.normal(ks[6], (1, F), jnp.float32),
        w2=xavier(ks[7], (F, D)),
        b2=jnp.zeros((1, D), jnp.float32),
    )


def reference_forward(x, params, num_heads):
    """Pure-JAX f32 reference matching the PyTorch module semantics (dropout=0)."""
    B, L, D = x.shape
    Dh = D // num_heads

    def ln(v, g, b):
        mu = v.mean(-1, keepdims=True)
        var = ((v - mu) ** 2).mean(-1, keepdims=True)
        return (v - mu) / jnp.sqrt(var + 1e-6) * g[0] + b[0]

    h0 = x
    xn = ln(x, params['ln1_g'], params['ln1_b'])
    q = xn @ params['wq'] + params['bq'][0]
    k = xn @ params['wk'] + params['bk'][0]
    v = xn @ params['wv'] + params['bv'][0]
    q = q.reshape(B, L, num_heads, Dh).transpose(0, 2, 1, 3)
    k = k.reshape(B, L, num_heads, Dh).transpose(0, 2, 1, 3)
    v = v.reshape(B, L, num_heads, Dh).transpose(0, 2, 1, 3)
    scores = jnp.einsum('bhqd,bhkd->bhqk', q, k) / math.sqrt(Dh)
    weights = jax.nn.softmax(scores, axis=-1)
    ctx = jnp.einsum('bhqk,bhkd->bhqd', weights, v)
    ctx = ctx.transpose(0, 2, 1, 3).reshape(B, L, D)
    att_out = ctx @ params['wo'] + params['bo'][0]
    x1 = att_out + h0
    xn2 = ln(x1, params['ln2_g'], params['ln2_b'])
    h = xn2 @ params['w1'] + params['b1'][0]
    h = 0.5 * h * (1.0 + jax.lax.erf(h / math.sqrt(2.0)))
    h = h @ params['w2'] + params['b2'][0]
    return x1 + h, weights


if __name__ == "__main__":
    # small shapes consistent with the module
    B, L = 2, 8
    d_model, nhead, dim_feedforward = 32, 4, 128

    key = jax.random.PRNGKey(0)
    kx, kp = jax.random.split(key)
    x = jax.random.normal(kx, (B, L, d_model), jnp.float32)
    params = init_params(kp, d_model, dim_feedforward)

    out, weights = transformer_layer(x, params, num_heads=nhead)
    out = jax.block_until_ready(out)
    weights = jax.block_until_ready(weights)

    ref_out, ref_w = reference_forward(x, params, nhead)
    assert out.shape == (B, L, d_model)
    assert weights.shape == (B, nhead, L, L)
    # bf16 MXU operands + approximate softmax reciprocal -> relaxed tolerances vs f32 ref.
    assert jnp.allclose(out, ref_out, atol=5e-2, rtol=5e-2), \
        f"max |diff| = {jnp.max(jnp.abs(out - ref_out))}"
    assert jnp.allclose(weights, ref_w, atol=2e-2, rtol=2e-2), \
        f"max |diff| = {jnp.max(jnp.abs(weights - ref_w))}"

    print("KERNEL_OK")
</pallas_src>

<mosaic_0001>
module attributes {stable_mosaic.version = 11 : i64} {
  func.func @ln_qkv_kernel(%arg0: i32, %arg1: i32, %arg2: memref<1x8x32xf32, #tpu.memory_space<vmem>>, %arg3: memref<1x32xf32, #tpu.memory_space<vmem>>, %arg4: memref<1x32xf32, #tpu.memory_space<vmem>>, %arg5: memref<32x32xbf16, #tpu.memory_space<vmem>>, %arg6: memref<1x32xf32, #tpu.memory_space<vmem>>, %arg7: memref<32x32xbf16, #tpu.memory_space<vmem>>, %arg8: memref<1x32xf32, #tpu.memory_space<vmem>>, %arg9: memref<32x32xbf16, #tpu.memory_space<vmem>>, %arg10: memref<1x32xf32, #tpu.memory_space<vmem>>, %arg11: memref<1x4x8x8xbf16, #tpu.memory_space<vmem>>, %arg12: memref<1x4x8x8xbf16, #tpu.memory_space<vmem>>, %arg13: memref<1x4x8x8xbf16, #tpu.memory_space<vmem>>) attributes {dimension_semantics = [#tpu.dimension_semantics<parallel>, #tpu.dimension_semantics<parallel>], iteration_bounds = array<i64: 2, 1>, scalar_prefetch = 0 : i64, scratch_operands = 0 : i64, tpu.core_type = #tpu.core_type<tc>, window_params = [{transform_indices = @transform_0, window_bounds = array<i64: 1, 8, 32>}, {pipeline_mode = #tpu.pipeline_mode<synchronous>, transform_indices = @transform_1, window_bounds = array<i64: 1, 32>}, {pipeline_mode = #tpu.pipeline_mode<synchronous>, transform_indices = @transform_2, window_bounds = array<i64: 1, 32>}, {pipeline_mode = #tpu.pipeline_mode<synchronous>, transform_indices = @transform_3, window_bounds = array<i64: 32, 32>}, {pipeline_mode = #tpu.pipeline_mode<synchronous>, transform_indices = @transform_4, window_bounds = array<i64: 1, 32>}, {pipeline_mode = #tpu.pipeline_mode<synchronous>, transform_indices = @transform_5, window_bounds = array<i64: 32, 32>}, {pipeline_mode = #tpu.pipeline_mode<synchronous>, transform_indices = @transform_6, window_bounds = array<i64: 1, 32>}, {pipeline_mode = #tpu.pipeline_mode<synchronous>, transform_indices = @transform_7, window_bounds = array<i64: 32, 32>}, {pipeline_mode = #tpu.pipeline_mode<synchronous>, transform_indices = @transform_8, window_bounds = array<i64: 1, 32>}, {transform_indices = @transform_9, window_bounds = array<i64: 1, 4, 8, 8>}, {transform_indices = @transform_10, window_bounds = array<i64: 1, 4, 8, 8>}, {transform_indices = @transform_11, window_bounds = array<i64: 1, 4, 8, 8>}]} {
    %c0 = arith.constant 0 : index
    %c0_0 = arith.constant 0 : index
    %c0_1 = arith.constant 0 : index
    %0 = vector.load %arg2[%c0, %c0_0, %c0_1] : memref<1x8x32xf32, #tpu.memory_space<vmem>>, vector<1x8x32xf32>
    %1 = vector.shape_cast %0 : vector<1x8x32xf32> to vector<8x32xf32>
    %cst = arith.constant dense<0.000000e+00> : vector<8xf32>
    %2 = vector.multi_reduction <add>, %1, %cst [1] : vector<8x32xf32> to vector<8xf32>
    %3 = vector.shape_cast %2 : vector<8xf32> to vector<8x1xf32>
    %cst_2 = arith.constant 3.200000e+01 : f32
    %4 = vector.broadcast %cst_2 : f32 to vector<8x1xf32>
    %5 = arith.divf %3, %4 : vector<8x1xf32>
    %6 = vector.broadcast %5 : vector<8x1xf32> to vector<8x32xf32>
    %7 = arith.subf %1, %6 : vector<8x32xf32>
    %8 = arith.mulf %7, %7 : vector<8x32xf32>
    %cst_3 = arith.constant dense<0.000000e+00> : vector<8xf32>
    %9 = vector.multi_reduction <add>, %8, %cst_3 [1] : vector<8x32xf32> to vector<8xf32>
    %10 = vector.shape_cast %9 : vector<8xf32> to vector<8x1xf32>
    %cst_4 = arith.constant 3.200000e+01 : f32
    %11 = vector.broadcast %cst_4 : f32 to vector<8x1xf32>
    %12 = arith.divf %10, %11 : vector<8x1xf32>
    %13 = vector.broadcast %5 : vector<8x1xf32> to vector<8x32xf32>
    %14 = arith.subf %1, %13 : vector<8x32xf32>
    %cst_5 = arith.constant 9.99999997E-7 : f32
    %15 = vector.broadcast %cst_5 : f32 to vector<8x1xf32>
    %16 = arith.addf %12, %15 : vector<8x1xf32>
    %17 = math.rsqrt %16 : vector<8x1xf32>
    %18 = vector.broadcast %17 : vector<8x1xf32> to vector<8x32xf32>
    %19 = arith.mulf %14, %18 : vector<8x32xf32>
    %c0_6 = arith.constant 0 : index
    %c0_7 = arith.constant 0 : index
    %20 = vector.load %arg3[%c0_6, %c0_7] : memref<1x32xf32, #tpu.memory_space<vmem>>, vector<1x32xf32>
    %21 = vector.shape_cast %20 : vector<1x32xf32> to vector<32xf32>
    %22 = vector.shape_cast %21 : vector<32xf32> to vector<1x32xf32>
    %23 = vector.broadcast %22 : vector<1x32xf32> to vector<8x32xf32>
    %24 = arith.mulf %19, %23 : vector<8x32xf32>
    %c0_8 = arith.constant 0 : index
    %c0_9 = arith.constant 0 : index
    %25 = vector.load %arg4[%c0_8, %c0_9] : memref<1x32xf32, #tpu.memory_space<vmem>>, vector<1x32xf32>
    %26 = vector.shape_cast %25 : vector<1x32xf32> to vector<32xf32>
    %27 = vector.shape_cast %26 : vector<32xf32> to vector<1x32xf32>
    %28 = vector.broadcast %27 : vector<1x32xf32> to vector<8x32xf32>
    %29 = arith.addf %24, %28 : vector<8x32xf32>
    %30 = arith.truncf %29 : vector<8x32xf32> to vector<8x32xbf16>
    %c0_10 = arith.constant 0 : index
    %c0_11 = arith.constant 0 : index
    %31 = vector.load %arg5[%c0_10, %c0_11] : memref<32x32xbf16, #tpu.memory_space<vmem>>, vector<32x32xbf16>
    %cst_12 = arith.constant dense<0.000000e+00> : vector<8x32xf32>
    %32 = tpu.matmul %30, %31, %cst_12 {dimension_numbers = #tpu.dot_dimension_numbers<[1], [0], [0], [1], [0, 0, 1, 1], [], []>} : vector<8x32xbf16>, vector<32x32xbf16>, vector<8x32xf32> -> vector<8x32xf32>
    %c0_13 = arith.constant 0 : index
    %c0_14 = arith.constant 0 : index
    %33 = vector.load %arg6[%c0_13, %c0_14] : memref<1x32xf32, #tpu.memory_space<vmem>>, vector<1x32xf32>
    %34 = vector.shape_cast %33 : vector<1x32xf32> to vector<32xf32>
    %35 = vector.shape_cast %34 : vector<32xf32> to vector<1x32xf32>
    %36 = vector.broadcast %35 : vector<1x32xf32> to vector<8x32xf32>
    %37 = arith.addf %32, %36 : vector<8x32xf32>
    %38 = vector.shape_cast %37 : vector<8x32xf32> to vector<8x4x8xf32>
    %39 = tpu.transpose %38, [1, 0, 2] : vector<8x4x8xf32> -> vector<4x8x8xf32>
    %40 = arith.truncf %39 : vector<4x8x8xf32> to vector<4x8x8xbf16>
    %c0_15 = arith.constant 0 : index
    %c0_16 = arith.constant 0 : index
    %c0_17 = arith.constant 0 : index
    %c0_18 = arith.constant 0 : index
    %41 = vector.load %arg11[%c0_15, %c0_16, %c0_17, %c0_18] : memref<1x4x8x8xbf16, #tpu.memory_space<vmem>>, vector<1x4x8x8xbf16>
    %42 = vector.shape_cast %41 : vector<1x4x8x8xbf16> to vector<4x8x8xbf16>
    %43 = vector.shape_cast %40 : vector<4x8x8xbf16> to vector<1x4x8x8xbf16>
    tpu.vector_store %arg11[%c0_15, %c0_16, %c0_17, %c0_18], %43 {strides = array<i32>} : memref<1x4x8x8xbf16, #tpu.memory_space<vmem>>, vector<1x4x8x8xbf16>,
    %c0_19 = arith.constant 0 : index
    %c0_20 = arith.constant 0 : index
    %44 = vector.load %arg7[%c0_19, %c0_20] : memref<32x32xbf16, #tpu.memory_space<vmem>>, vector<32x32xbf16>
    %cst_21 = arith.constant dense<0.000000e+00> : vector<8x32xf32>
    %45 = tpu.matmul %30, %44, %cst_21 {dimension_numbers = #tpu.dot_dimension_numbers<[1], [0], [0], [1], [0, 0, 1, 1], [], []>} : vector<8x32xbf16>, vector<32x32xbf16>, vector<8x32xf32> -> vector<8x32xf32>
    %c0_22 = arith.constant 0 : index
    %c0_23 = arith.constant 0 : index
    %46 = vector.load %arg8[%c0_22, %c0_23] : memref<1x32xf32, #tpu.memory_space<vmem>>, vector<1x32xf32>
    %47 = vector.shape_cast %46 : vector<1x32xf32> to vector<32xf32>
    %48 = vector.shape_cast %47 : vector<32xf32> to vector<1x32xf32>
    %49 = vector.broadcast %48 : vector<1x32xf32> to vector<8x32xf32>
    %50 = arith.addf %45, %49 : vector<8x32xf32>
    %51 = vector.shape_cast %50 : vector<8x32xf32> to vector<8x4x8xf32>
    %52 = tpu.transpose %51, [1, 0, 2] : vector<8x4x8xf32> -> vector<4x8x8xf32>
    %53 = arith.truncf %52 : vector<4x8x8xf32> to vector<4x8x8xbf16>
    %c0_24 = arith.constant 0 : index
    %c0_25 = arith.constant 0 : index
    %c0_26 = arith.constant 0 : index
    %c0_27 = arith.constant 0 : index
    %54 = vector.load %arg12[%c0_24, %c0_25, %c0_26, %c0_27] : memref<1x4x8x8xbf16, #tpu.memory_space<vmem>>, vector<1x4x8x8xbf16>
    %55 = vector.shape_cast %54 : vector<1x4x8x8xbf16> to vector<4x8x8xbf16>
    %56 = vector.shape_cast %53 : vector<4x8x8xbf16> to vector<1x4x8x8xbf16>
    tpu.vector_store %arg12[%c0_24, %c0_25, %c0_26, %c0_27], %56 {strides = array<i32>} : memref<1x4x8x8xbf16, #tpu.memory_space<vmem>>, vector<1x4x8x8xbf16>,
    %c0_28 = arith.constant 0 : index
    %c0_29 = arith.constant 0 : index
    %57 = vector.load %arg9[%c0_28, %c0_29] : memref<32x32xbf16, #tpu.memory_space<vmem>>, vector<32x32xbf16>
    %cst_30 = arith.constant dense<0.000000e+00> : vector<8x32xf32>
    %58 = tpu.matmul %30, %57, %cst_30 {dimension_numbers = #tpu.dot_dimension_numbers<[1], [0], [0], [1], [0, 0, 1, 1], [], []>} : vector<8x32xbf16>, vector<32x32xbf16>, vector<8x32xf32> -> vector<8x32xf32>
    %c0_31 = arith.constant 0 : index
    %c0_32 = arith.constant 0 : index
    %59 = vector.load %arg10[%c0_31, %c0_32] : memref<1x32xf32, #tpu.memory_space<vmem>>, vector<1x32xf32>
    %60 = vector.shape_cast %59 : vector<1x32xf32> to vector<32xf32>
    %61 = vector.shape_cast %60 : vector<32xf32> to vector<1x32xf32>
    %62 = vector.broadcast %61 : vector<1x32xf32> to vector<8x32xf32>
    %63 = arith.addf %58, %62 : vector<8x32xf32>
    %64 = vector.shape_cast %63 : vector<8x32xf32> to vector<8x4x8xf32>
    %65 = tpu.transpose %64, [1, 0, 2] : vector<8x4x8xf32> -> vector<4x8x8xf32>
    %66 = arith.truncf %65 : vector<4x8x8xf32> to vector<4x8x8xbf16>
    %c0_33 = arith.constant 0 : index
    %c0_34 = arith.constant 0 : index
    %c0_35 = arith.constant 0 : index
    %c0_36 = arith.constant 0 : index
    %67 = vector.load %arg13[%c0_33, %c0_34, %c0_35, %c0_36] : memref<1x4x8x8xbf16, #tpu.memory_space<vmem>>, vector<1x4x8x8xbf16>
    %68 = vector.shape_cast %67 : vector<1x4x8x8xbf16> to vector<4x8x8xbf16>
    %69 = vector.shape_cast %66 : vector<4x8x8xbf16> to vector<1x4x8x8xbf16>
    tpu.vector_store %arg13[%c0_33, %c0_34, %c0_35, %c0_36], %69 {strides = array<i32>} : memref<1x4x8x8xbf16, #tpu.memory_space<vmem>>, vector<1x4x8x8xbf16>,
    return
  }
  func.func @transform_0(%arg0: i32, %arg1: i32) -> (i32, i32, i32) {
    %c0_i32 = arith.constant 0 : i32
    %c0_i32_0 = arith.constant 0 : i32
    return %arg0, %arg1, %c0_i32 : i32, i32, i32
  }
  func.func @transform_1(%arg0: i32, %arg1: i32) -> (i32, i32) {
    %c0_i32 = arith.constant 0 : i32
    %c0_i32_0 = arith.constant 0 : i32
    %c0_i32_1 = arith.constant 0 : i32
    return %c0_i32, %c0_i32_0 : i32, i32
  }
  func.func @transform_2(%arg0: i32, %arg1: i32) -> (i32, i32) {
    %c0_i32 = arith.constant 0 : i32
    %c0_i32_0 = arith.constant 0 : i32
    %c0_i32_1 = arith.constant 0 : i32
    return %c0_i32, %c0_i32_0 : i32, i32
  }
  func.func @transform_3(%arg0: i32, %arg1: i32) -> (i32, i32) {
    %c0_i32 = arith.constant 0 : i32
    %c0_i32_0 = arith.constant 0 : i32
    %c0_i32_1 = arith.constant 0 : i32
    return %c0_i32, %c0_i32_0 : i32, i32
  }
  func.func @transform_4(%arg0: i32, %arg1: i32) -> (i32, i32) {
    %c0_i32 = arith.constant 0 : i32
    %c0_i32_0 = arith.constant 0 : i32
    %c0_i32_1 = arith.constant 0 : i32
    return %c0_i32, %c0_i32_0 : i32, i32
  }
  func.func @transform_5(%arg0: i32, %arg1: i32) -> (i32, i32) {
    %c0_i32 = arith.constant 0 : i32
    %c0_i32_0 = arith.constant 0 : i32
    %c0_i32_1 = arith.constant 0 : i32
    return %c0_i32, %c0_i32_0 : i32, i32
  }
  func.func @transform_6(%arg0: i32, %arg1: i32) -> (i32, i32) {
    %c0_i32 = arith.constant 0 : i32
    %c0_i32_0 = arith.constant 0 : i32
    %c0_i32_1 = arith.constant 0 : i32
    return %c0_i32, %c0_i32_0 : i32, i32
  }
  func.func @transform_7(%arg0: i32, %arg1: i32) -> (i32, i32) {
    %c0_i32 = arith.constant 0 : i32
    %c0_i32_0 = arith.constant 0 : i32
    %c0_i32_1 = arith.constant 0 : i32
    return %c0_i32, %c0_i32_0 : i32, i32
  }
  func.func @transform_8(%arg0: i32, %arg1: i32) -> (i32, i32) {
    %c0_i32 = arith.constant 0 : i32
    %c0_i32_0 = arith.constant 0 : i32
    %c0_i32_1 = arith.constant 0 : i32
    return %c0_i32, %c0_i32_0 : i32, i32
  }
  func.func @transform_9(%arg0: i32, %arg1: i32) -> (i32, i32, i32, i32) {
    %c0_i32 = arith.constant 0 : i32
    %c0_i32_0 = arith.constant 0 : i32
    %c0_i32_1 = arith.constant 0 : i32
    return %arg0, %c0_i32, %arg1, %c0_i32_0 : i32, i32, i32, i32
  }
  func.func @transform_10(%arg0: i32, %arg1: i32) -> (i32, i32, i32, i32) {
    %c0_i32 = arith.constant 0 : i32
    %c0_i32_0 = arith.constant 0 : i32
    %c0_i32_1 = arith.constant 0 : i32
    return %arg0, %c0_i32, %arg1, %c0_i32_0 : i32, i32, i32, i32
  }
  func.func @transform_11(%arg0: i32, %arg1: i32) -> (i32, i32, i32, i32) {
    %c0_i32 = arith.constant 0 : i32
    %c0_i32_0 = arith.constant 0 : i32
    %c0_i32_1 = arith.constant 0 : i32
    return %arg0, %c0_i32, %arg1, %c0_i32_0 : i32, i32, i32, i32
  }
}

</mosaic_0001>

<bundles_post_ra>
// kernel: tpu_custom_call.1
= control target key start
LH: loop header
LB: loop body
LE: loop exit
PB: predicated region body
PF: predicated region fallthrough
CT: control target
= control target key end

     0   :  { %s2331_s0 = inlined_call_operand.hbm [shape: f32[2,8,32], index: 0, kind: input, shape index: {}]   ;;  %s2332_s1 = inlined_call_operand.vmem [shape: f32[1,32], index: 1, kind: input, shape index: {}]   ;;  %s2333_s2 = inlined_call_operand.vmem [shape: f32[1,32], index: 2, kind: input, shape index: {}]   ;;  %s2334_s3 = inlined_call_operand.hbm [shape: bf16[32,32], index: 3, kind: input, shape index: {}]   ;;  %s2335_s4 = inlined_call_operand.vmem [shape: f32[1,32], index: 4, kind: input, shape index: {}]   ;;  %s2336_s5 = inlined_call_operand.hbm [shape: bf16[32,32], index: 5, kind: input, shape index: {}]   ;;  %s2337_s6 = inlined_call_operand.vmem [shape: f32[1,32], index: 6, kind: input, shape index: {}]   ;;  %s2338_s7 = inlined_call_operand.hbm [shape: bf16[32,32], index: 7, kind: input, shape index: {}]   ;;  %s2339_s8 = inlined_call_operand.vmem [shape: f32[1,32], index: 8, kind: input, shape index: {}]   ;;  %s2340_s9 = inlined_call_operand.hbm [shape: bf16[2,4,8,8], index: 9, kind: output, shape index: {0}]   ;;  %s2341_s10 = inlined_call_operand.hbm [shape: bf16[2,4,8,8], index: 10, kind: output, shape index: {1}]   ;;  %s2342_s11 = inlined_call_operand.hbm [shape: bf16[2,4,8,8], index: 11, kind: output, shape index: {2}]  }
   0x1   :  { %2350 = sst [smem:[#allocation22_spill]] %s2334_s3 }
   0x2   :  { %2351 = sst [smem:[#allocation23_spill]] %s2336_s5 }
   0x3   :  { %2352 = sst [smem:[#allocation24_spill]] %s2338_s7 }
   0x4   :  { %2353 = sst [smem:[#allocation25_spill]] %s2342_s11 }
   0x5   :  { %17 = vsyncpa [#allocation3], 0 }
   0x6   :  { %19 = vsyncpa [#allocation3 + $0x1], 0 }
   0x7   :  { %20 = vsyncpa [#allocation6], 0 }
   0x8   :  { %21 = vsyncpa [#allocation9], 0 }
   0x9   :  { %22 = vsyncpa [#allocation4], 0 }
   0xa   :  { %24 = vsyncpa [#allocation4 + $0x1], 0 }
   0xb   :  { %25 = vsyncpa [#allocation12], 0 }
   0xc   :  { %27 = vsyncpa [#allocation12 + $0x1], 0  ;;  %s1947_s17 = smov 0   ;;  %s1949_s18 = smov 0  }
   0xd   :  { %s1951_s19 = smov 0   ;;  %s1953_s20 = smov 0  }
   0xe   :  { %s1955_s21 = smov 0   ;;  %s1957_s22 = smov 0  }
   0xf LB: > { %2354 = sst [smem:[#allocation19_spill]] %s1847_s17  ;;  %s1978_s23 = sadd.s32 4294967295, %s1867_s22   ;;  %s1867_s22 = sphi %s1957_s22, %s33_s22   ;;  %s1863_s21 = sphi %s1955_s21, %s2383_s21   ;;  %s1859_s20 = sphi %s1953_s20, %s2382_s20   ;;  %s1855_s19 = sphi %s1951_s19, %s2381_s19   ;;  %s1851_s18 = sphi %s1949_s18, %s2380_s18   ;;  %s1847_s17 = sphi %s1947_s17, %s2379_s17  }
  0x10   : > { %s2343_s24 = sadd.s32 4294967294, %s1867_s22   ;;  %p67_p0 = scmp.ne.s32.totalorder %s1851_s18, %s1847_s17 }
  0x11   : > { %p2345_p1 = scmp.eq.s32.totalorder %s1978_s23, 0  ;;  %p267_p3 = scmp.eq.s32.totalorder %s2343_s24, 1 }
  0x12   : > { %p1413_p5 = scmp.ge.s32.totalorder %s1867_s22, 1  ;;  %p330_p7 = scmp.lt.s32.totalorder %s1867_s22, 3 }
  0x13   : > { %p1989_p4 = por %p2345_p1, %p67_p0  ;;  %p1994_p6 = por %p267_p3, %p67_p0 }
  0x14   : > { %p1999_p8 = pnand %p1413_p5, %p330_p7  ;;  %s1869_s28 = smov [#allocation5]  }
  0x15   : > { %s2355_s25 = scalar_select %p1989_p4, 1, 0 }
  0x16   : > { %s2356_s26 = scalar_select %p1994_p6, 1, 0 }
  0x17   : > { %s348_s29 = sshll.u32 %s1869_s28, 4  ;;  %p1515_p9 = pneg %p1999_p8  ;;  %s349_s29 = int_to_ptr.vmem [resolvable:$true] %s348_s29 }
  0x18   : > { %2357 = sst [smem:[#allocation20_spill]] %s2356_s26  ;;  %s1870_s12 = smov [#allocation7]  }
  0x19   : > { %p2008_p11 = pnand %p1515_p9, %p2345_p1  ;;  %s364_s13 = sshll.u32 %s1870_s12, 4  ;;  %s365_s13 = int_to_ptr.vmem [resolvable:$true] %s364_s13 }
  0x1a   : > { %s1871_s14 = smov [#allocation8]   ;;  %s1628_s16 = scalar_lea.vmem %s349_s29, 256 }
  0x1b   : > { %s380_s15 = sshll.u32 %s1871_s14, 4  ;;  %p1619_p12 = pneg %p2008_p11  ;;  %s381_s15 = int_to_ptr.vmem [resolvable:$true] %s380_s15 }
  0x1c   : > { %p1629_p13 = scmp.ne.s32.totalorder %s349_s29, %s1628_s16  ;;  %p1636_p5 = scmp.lt.s32.totalorder %s349_s29, %s349_s29 }
  0x1d   : > { %p1637_p7 = scmp.lt.s32.totalorder %s1628_s16, %s1628_s16 }
  0x1e   : > { %p1631_p0 = pnand %p1629_p13, %p1619_p12 }
  0x1f   : > { %p1638_p9 = por %p1637_p7, %p1636_p5 }
  0x20   : > { %p1632_p3 = pneg %p1631_p0 }
  0x22   : > { %p1639_p10 = pnand %p1638_p9, %p1632_p3 }
  0x24   : > { %1642 = shalt.err (!%p1639_p10)
}
  0x25   : > { %s1872_s28 = smov 64   ;;  %s1873_s12 = smov 4  }
  0x26   : > { %s2360_s3 = sld [smem:[#allocation22_spill]]  ;;  %s1654_s26 = scalar_lea.vmem %s365_s13, 256 }
  0x27   : > { %p1655_p1 = scmp.ne.s32.totalorder %s365_s13, %s1654_s26  ;;  %p1662_p2 = scmp.lt.s32.totalorder %s365_s13, %s365_s13 }
  0x28   : > { %p1663_p6 = scmp.lt.s32.totalorder %s1654_s26, %s1654_s26 }
  0x29   : > { %p1657_p13 = pnand %p1655_p1, %p1619_p12 }
  0x2a   : > { %p1664_p5 = por %p1663_p6, %p1662_p2 }
  0x2b   : > { %p1658_p0 = pneg %p1657_p13 }
  0x2c   : > { %1518 = dma.hbm_to_vmem [thread:$0]  (!%p2008_p11), %s2360_s3, 256, %s349_s29, [#allocation6], %s1872_s28, %s1872_s28, %s1873_s12  }
  0x2d   : > { %p1665_p3 = pnand %p1664_p5, %p1658_p0 }
  0x2f   : > { %1668 = shalt.err (!%p1665_p3)
}
  0x30   : > { %s2361_s5 = sld [smem:[#allocation23_spill]]  ;;  %s1680_s24 = scalar_lea.vmem %s381_s15, 256 }
  0x31   : > { %p1681_p10 = scmp.ne.s32.totalorder %s381_s15, %s1680_s24  ;;  %p1688_p9 = scmp.lt.s32.totalorder %s381_s15, %s381_s15 }
  0x32   : > { %p1689_p13 = scmp.lt.s32.totalorder %s1680_s24, %s1680_s24 }
  0x33   : > { %p1683_p7 = pnand %p1681_p10, %p1619_p12 }
  0x34   : > { %p1690_p4 = por %p1689_p13, %p1688_p9 }
  0x35   : > { %p1684_p1 = pneg %p1683_p7 }
  0x36   : > { %1521 = dma.hbm_to_vmem [thread:$0]  (!%p2008_p11), %s2361_s5, 256, %s365_s13, [#allocation6], %s1872_s28, %s1872_s28, %s1873_s12  }
  0x37   : > { %p1691_p2 = pnand %p1690_p4, %p1684_p1 }
  0x39   : > { %1694 = shalt.err (!%p1691_p2)
}
  0x3a   : > { %s2362_s7 = sld [smem:[#allocation24_spill]]  ;;  %s54_s17 = sadd.s32 1, %s1855_s19 }
  0x3b   : > { %s45_s13 = sadd.s32 1, %s1863_s21  ;;  %p61_p4 = scmp.ne.s32.totalorder %s1855_s19, %s1851_s18 }
  0x3c   : > { %p47_p6 = scmp.ge.s32.totalorder %s45_s13, 2  ;;  %p62_p12 = scmp.eq.s32.totalorder %s1867_s22, 0 }
  0x3d   : > { %p2363_p0 = scmp.eq.s32.totalorder %s1978_s23, 1  ;;  %p1542_p3 = scmp.lt.s32.totalorder %s1867_s22, 2 }
  0x3e   : > { %s2385_s13 = smov (%p47_p6, %s45_s13), 0  ;;  %p63_p10 = por %p62_p12, %p61_p4 }
  0x3f   : > { %p2045_p5 = por %p2363_p0, %p61_p4  ;;  %2365 = sst [smem:[#allocation21_spill]] %s2385_s13 }
  0x40   : > { %1524 = dma.hbm_to_vmem [thread:$0]  (!%p2008_p11), %s2362_s7, 256, %s381_s15, [#allocation9], %s1872_s28, %s1872_s28, %s1873_s12  }
  0x41   : > { %s397_s14 = sand.u32 1, %s1855_s19   ;;  %s49_s16 = ssub.s32 %s1863_s21, %s2385_s13 }
  0x42   : > { %p52_p7 = scmp.eq.s32.totalorder %s49_s16, 0  ;;  %s1418_s15 = sshll.u32 %s397_s14, 3 }
  0x43   : > { %s1419_s28 = sshll.u32 %s1863_s21, 7  ;;  %s401_s3 = scalar_lea.vmem [#allocation2], %s1418_s15 }
  0x44   : > { %s2057_s12 = scalar_select %p52_p7, %s1855_s19, %s54_s17  }
  0x45   : > { %s407_s29 = scalar_lea.hbm %s2331_s0, %s1419_s28  ;;  %s409_s5 = sshll.u32 %s401_s3, 4  ;;  %s410_s5 = int_to_ptr.vmem [resolvable:$true] %s409_s5 }
  0x46   : > { %p2064_p11 = pnand %p1542_p3, %p63_p10  ;;  %s398_s11 = scalar_lea.sflag [#allocation3], %s397_s14 }
  0x47   : > { %s1708_s16 = scalar_lea.vmem %s410_s5, 128  ;;  %s1874_s17 = smov [#allocation2]  }
  0x48   : > { %p1697_p1 = pneg %p2064_p11  ;;  %p1709_p9 = scmp.ne.s32.totalorder %s410_s5, %s1708_s16 }
  0x49   : > { %s1713_s13 = sshll.u32 %s1874_s17, 4  ;;  %s1714_s13 = int_to_ptr.vmem [resolvable:$false] %s1713_s13 }
  0x4a   : > { %p1711_p13 = pnand %p1709_p9, %p1697_p1  ;;  %s1715_s28 = scalar_lea.vmem %s1714_s13, 256 }
  0x4b   : > { %p1716_p4 = scmp.lt.s32.totalorder %s410_s5, %s1714_s13  ;;  %p1717_p6 = scmp.lt.s32.totalorder %s1715_s28, %s1708_s16 }
  0x4c   : > { %p1712_p2 = pneg %p1711_p13 }
  0x4d   : > { %p1718_p12 = por %p1717_p6, %p1716_p4 }
  0x4f   : > { %p1719_p0 = pnand %p1718_p12, %p1712_p2 }
  0x51   : > { %1722 = shalt.err (!%p1719_p0)
}
  0x52   : > { %1528 = dma.hbm_to_vmem [thread:$0]  (!%p2064_p11), %s407_s29, 128, %s410_s5, %s398_s11  }
  0x53   : > { %418 = sbr.rel (%p1999_p8) target bundleno = 808 (0x328), region = 56  ;;  %s2075_s3 = sand.u32 (!%p1999_p8), 1, %s1851_s18  }
  0x54   : > { %s1421_s14 = sshll.u32 (!%p1999_p8), %s2075_s3, 3  ;;  %s421_s15 = scalar_lea.sflag (!%p1999_p8), [#allocation3], %s2075_s3 }
  0x55   : > { %s424_s24 = scalar_lea.vmem (!%p1999_p8), [#allocation2], %s1421_s14  ;;  %p2367_p3 = scmp.ne.s32.totalorder (!%p1999_p8), %s2355_s25, 0 }
  0x58   : > { %1826 = dma.done.wait (%p2367_p3), %s421_s15, 128  }
  0x59   : > { %1828 = vsyncadd (%p2367_p3), %s421_s15, 4294967168  ;;  %p2368_p10 = scmp.eq.s32.totalorder %s1978_s23, 0 }
  0x5b   : > { %1830 = dma.done.wait (%p2368_p10), [#allocation6], 512   ;;  %p2369_p7 = pmov %p2368_p10 }
  0x5d   : > { %1832 = vsyncadd (%p2369_p7), [#allocation6], 4294966784  ;;  %p2370_p8 = pmov %p2369_p7 }
  0x5e   : > { %p2371_p11 = pmov %p2369_p7 }
  0x5f   : > { %1834 = dma.done.wait (%p2370_p8), [#allocation9], 256  }
  0x60   : > { %1836 = vsyncadd (%p2371_p11), [#allocation9], 4294967040  ;;  %vm487_vm0 = vcmask 261120   ;;  %v486_v0 = vld [vmem:[%s424_s24] sm:$0xff]  ;;  %v1609_v7 = vld [vmem:[#allocation5 + $0x8] sm:$0xff]   ;;  %v1875_v9 = vmov 0.0   ;;  %v600_v44 = vlaneseq }
  0x61   : > { %v488_v1 = vsel %vm487_vm0, %v486_v0, 0.0  ;;  %v1610_v8 = vld [vmem:[#allocation7 + $0x8] sm:$0xff]   ;;  %1471 = vmatprep.subr.bf16.mxu0 %v1875_v9  ;;  %1479 = vmatprep.subr.bf16.mxu1 %v1875_v9  ;;  %v1611_v10 = vld [vmem:[#allocation5] sm:$0xff]   ;;  %v1612_v11 = vld [vmem:[#allocation7] sm:$0xff]   ;;  %vm1876_vm1 = vmmov 0   ;;  %s1877_s26 = smov 104  }
  0x62   : > { %489 = vadd.xlane.f32.xlu0 %v488_v1  ;;  %1472 = vmatpush3.bf16.msra.mxu0 %v1609_v7  ;;  %v1428_v16 = vld [vmem:[%s2332_s1] ss:$0 sm:$0xff]  ;;  %v1613_v21 = vld [vmem:[#allocation8 + $0x8] sm:$0xff]   ;;  %v1614_v23 = vld [vmem:[#allocation8] sm:$0xff]   ;;  %s1878_s29 = smov 120   ;;  %s1879_s28 = smov 112  }
  0x63   : > { %1480 = vmatpush3.bf16.msra.mxu1 %v1610_v8  ;;  %1473 = vmatprep.subr.bf16.mxu0 %v1875_v9  ;;  %v1429_v18 = vld [vmem:[%s2333_s2] ss:$0 sm:$0xff]  ;;  %v1880_v42 = vmov 1983009808   ;;  %v1881_v45 = vmov 1934713408  }
  0x64   : > { %1481 = vmatprep.subr.bf16.mxu1 %v1875_v9  ;;  %1475 = vmatprep.mubr.msk.bf16.mxu0 %vm1876_vm1, %v1875_v9  ;;  %v1436_v24 = vld [vmem:[%s2337_s6] ss:$0 sm:$0xff]  ;;  %v598_v43 = vunpack.c.l.s4 %v1880_v42  ;;  %v630_v46 = vunpack.c.l.s4 %v1881_v45  ;;  %v601_v48 = vshrl.u32 %v600_v44, 7  ;;  %s2143_s24 = sshll.u32 %s2075_s3, 4  ;;  %vm735_vm2 = vcmask 60416   ;;  %s1179_s5 = sand.u32 1, %s1978_s23  }
  0x65   : > { %1483 = vmatprep.mubr.msk.bf16.mxu1 %vm1876_vm1, %v1875_v9  ;;  %v1430_v32 = vld [vmem:[%s2335_s4] ss:$0 sm:$0xff]  ;;  %s2157_s7 = sshll.u32 %s1859_s20, 8  ;;  %s477_s11 = scalar_lea.vmem [#allocation11], %s2143_s24 }
  0x66   : > { %1474 = vmatpush3.bf16.msra.mxu0 %v1611_v10  ;;  %v1442_v40 = vld [vmem:[%s2339_s8] ss:$0 sm:$0xff]  ;;  %v599_v47 = vunpack.c.0.s8 %v598_v43  ;;  %v631_v51 = vunpack.c.0.s8 %v630_v46  ;;  %s1216_s25 = sshll.u32 %s477_s11, 4  ;;  %s2164_s20 = scalar_lea.hbm %s2341_s10, %s2157_s7  ;;  %s2166_s25 = int_to_ptr.vmem [resolvable:$true] %s1216_s25 }
  0x67   : > { %1482 = vmatpush3.bf16.msra.mxu1 %v1612_v11  ;;  %1487 = vmatprep.subr.bf16.mxu0 %v1875_v9  ;;  %s1882_s16 = smov [#allocation11]  }
  0x68   : > { %v2124_v52 = vsub.s32 %v599_v47, %v601_v48  ;;  %v2126_v58 = vsub.s32 %v631_v51, %v601_v48  ;;  %s1727_s17 = sshll.u32 %s1882_s16, 4  ;;  %s1728_s17 = int_to_ptr.vmem [resolvable:$false] %s1727_s17 }
  0x69   : > { %p1730_p2 = scmp.lt.s32.totalorder %s2166_s25, %s1728_s17 }
  0xeb   : > { %v490_v2 = vpop.xlane.xlu0 %489 }
  0xec   : > { %v492_v3 = vmul.f32 0.03125, %v490_v2 }
  0xee   : > { %v493_v4 = vsub.f32 %v486_v0, %v492_v3 }
  0xf0   : > { %v494_v5 = vmul.f32 %v493_v4, %v493_v4 }
  0xf2   : > { %v495_v6 = vsel %vm487_vm0, %v494_v5, 0.0 }
  0xf3   : > { %496 = vadd.xlane.f32.xlu0 %v495_v6 }
 0x17c   : > { %v497_v12 = vpop.xlane.xlu0 %496 }
 0x17d   : > { %v498_v13 = vmul.f32 0.03125, %v497_v12 }
 0x17f   : > { %v499_v14 = vadd.f32 1e-06, %v498_v13 }
 0x181   : > { %1615 = vrsqrt.f32 %v499_v14 }
 0x18e   : > { %v1616_v15 = vpop.eup %1615 }
 0x18f   : > { %v501_v17 = vmul.f32 %v1616_v15, %v493_v4 }
 0x191   : > { %v509_v19 = vmul.f32 %v1428_v16, %v501_v17 }
 0x193   : > { %v517_v20 = vadd.f32 %v1429_v18, %v509_v19 }
 0x195   : > { %v518_v22 = vpack.c.bf16 %v517_v20, %v517_v20 }
 0x197   : > { %1476 = vmatmul.mubr.msk.bf16.vlgmr.msra.gmra.mxu0 %vm487_vm0, %v518_v22  ;;  %1484 = vmatmul.mubr.msk.bf16.vlgmr.msra.gmra.mxu1 %vm487_vm0, %v518_v22 }
 0x198   : > { %1488 = vmatpush3.bf16.msra.mxu0 %v1613_v21  ;;  %1491 = vmatprep.mubr.msk.bf16.mxu0 %vm1876_vm1, %v1875_v9 }
 0x199   : > { %1489 = vmatprep.subr.bf16.mxu0 %v1875_v9 }
 0x19c   : > { %1490 = vmatpush3.bf16.msra.mxu0 %v1614_v23 }
 0x19f   : > { %1492 = vmatmul.mubr.msk.bf16.vlgmr.msra.gmra.mxu0 %vm487_vm0, %v518_v22 }
 0x257   : > { %v579_v25 = vpop.f32.mrf.mxu0  ;;  %v797_v26 = vpop.f32.mrf.mxu1 }
 0x258   : > { %v798_v27 = vadd.f32 %v1436_v24, %v797_v26  ;;  %v2111_v36 = vadd.f32 %v1430_v32, %v579_v25 }
 0x259   : > { %v1477_v28 = vpop.f32.mrf.mxu0  ;;  %v1485_v29 = vpop.f32.mrf.mxu1 }
 0x25a   : > { %810 = vrot.lane.b32.xlu0 %v798_v27, %s1877_s26  ;;  %804 = vrot.lane.b32.xlu1 %v798_v27, %s1878_s29 }
 0x25b   : > { %v582_v30 = vpop.f32.mrf.mxu0  ;;  %v800_v31 = vpop.f32.mrf.mxu1 }
 0x25d   : > { %v1478_v33 = vpop.f32.mrf.mxu0  ;;  %v1486_v34 = vpop.f32.mrf.mxu1 }
 0x25e   : > { %807 = vrot.lane.b32.xlu1 %v798_v27, %s1879_s28 }
 0x25f   : > { %v1014_v35 = vpop.f32.mrf.mxu0 }
 0x260   : > { %v2119_v41 = vadd.f32 %v1442_v40, %v1014_v35 }
 0x261   : > { %v1493_v37 = vpop.f32.mrf.mxu0 }
 0x262   : > { %586 = vrot.lane.b32.xlu1 %v2111_v36, %s1878_s29 }
 0x263   : > { %v1017_v38 = vpop.f32.mrf.mxu0 }
 0x265   : > { %v1494_v39 = vpop.f32.mrf.mxu0 }
 0x266   : > { %589 = vrot.lane.b32.xlu1 %v2111_v36, %s1879_s28 }
 0x26a   : > { %592 = vrot.lane.b32.xlu1 %v2111_v36, %s1877_s26 }
 0x26e   : > { %1021 = vrot.lane.b32.xlu1 %v2119_v41, %s1878_s29  ;;  %s1723_s29 = scalar_lea.vmem %s2166_s25, 256 }
 0x26f   : > { %p1724_p1 = scmp.ne.s32.totalorder %s2166_s25, %s1723_s29 }
 0x271   : > { %p1725_p9 = pnand %p1724_p1, %p2045_p5 }
 0x272   : > { %1024 = vrot.lane.b32.xlu1 %v2119_v41, %s1879_s28  ;;  %s1729_s28 = scalar_lea.vmem %s1728_s17, 512 }
 0x273   : > { %p1726_p13 = pneg %p1725_p9  ;;  %p1731_p4 = scmp.lt.s32.totalorder %s1729_s28, %s1723_s29 }
 0x275   : > { %p1732_p6 = por %p1731_p4, %p1730_p2 }
 0x276   : > { %1027 = vrot.lane.b32.xlu1 %v2119_v41, %s1877_s26  ;;  %s2178_s26 = scalar_lea.sflag [#allocation12], %s1179_s5 }
 0x277   : > { %p1733_p12 = pnand %p1732_p6, %p1726_p13 }
 0x2cc   : > { %v811_v49 = vpop.permute.xlu0 %810  ;;  %v805_v50 = vpop.permute.xlu1 %804 }
 0x2cd   : > { %v829_v53 = vcombine.low %v805_v50, %v811_v49  ;;  %v830_v54 = vcombine.high %v805_v50, %v811_v49 }
 0x2cf   : > { %v837_v59 = vrot.slane %v829_v53, %v2124_v52  ;;  %v844_v60 = vrot.slane %v830_v54, %v2124_v52 }
 0x2d0   : > { %v808_v55 = vpop.permute.xlu1 %807 }
 0x2d1   : > { %v813_v56 = vcombine.low %v798_v27, %v808_v55  ;;  %v814_v57 = vcombine.high %v798_v27, %v808_v55 }
 0x2d3   : > { %v821_v61 = vrot.slane %v813_v56, %v2124_v52  ;;  %v828_v62 = vrot.slane %v814_v57, %v2124_v52 }
 0x2d4   : > { %v587_v63 = vpop.permute.xlu1 %586 }
 0x2d5   : > { %v845_v0 = vcombine.low %v821_v61, %v837_v59  ;;  %v846_v1 = vcombine.high %v821_v61, %v837_v59  ;;  %v861_v2 = vcombine.low %v828_v62, %v844_v60  ;;  %v862_v3 = vcombine.high %v828_v62, %v844_v60 }
 0x2d7   : > { %v853_v4 = vrot.slane %v845_v0, %v2126_v58  ;;  %v860_v5 = vrot.slane %v846_v1, %v2126_v58  ;;  %v869_v6 = vrot.slane %v861_v2, %v2126_v58  ;;  %v876_v7 = vrot.slane %v862_v3, %v2126_v58 }
 0x2d8   : > { %v590_v8 = vpop.permute.xlu1 %589 }
 0x2d9   : > { %v881_v9 = vcombine.low %v853_v4, %v860_v5  ;;  %v1440_v10 = vcombine.high %v853_v4, %v860_v5  ;;  %v897_v11 = vcombine.low %v869_v6, %v876_v7  ;;  %v1441_v12 = vcombine.high %v869_v6, %v876_v7 }
 0x2da   : > { %v595_v17 = vcombine.low %v2111_v36, %v590_v8  ;;  %v596_v18 = vcombine.high %v2111_v36, %v590_v8 }
 0x2db   : > { %v888_v13 = vrot.slane %v881_v9, %v2124_v52  ;;  %v896_v14 = vrot.slane %v1440_v10, %v2124_v52  ;;  %v904_v15 = vrot.slane %v897_v11, %v2124_v52  ;;  %v912_v16 = vrot.slane %v1441_v12, %v2124_v52 }
 0x2dc   : > { %v593_v19 = vpop.permute.xlu1 %592  ;;  %v603_v30 = vrot.slane %v595_v17, %v2124_v52  ;;  %v610_v31 = vrot.slane %v596_v18, %v2124_v52 }
 0x2dd   : > { %v913_v20 = vcombine.low %v888_v13, %v896_v14  ;;  %v914_v21 = vcombine.high %v888_v13, %v896_v14  ;;  %v929_v22 = vcombine.low %v904_v15, %v912_v16  ;;  %v930_v23 = vcombine.high %v904_v15, %v912_v16 }
 0x2de   : > { %v611_v24 = vcombine.low %v587_v63, %v593_v19  ;;  %v612_v25 = vcombine.high %v587_v63, %v593_v19 }
 0x2df   : > { %v921_v26 = vrot.slane %v913_v20, %v2126_v58  ;;  %v928_v27 = vrot.slane %v914_v21, %v2126_v58  ;;  %v937_v28 = vrot.slane %v929_v22, %v2126_v58  ;;  %v944_v29 = vrot.slane %v930_v23, %v2126_v58 }
 0x2e0   : > { %v619_v32 = vrot.slane %v611_v24, %v2124_v52  ;;  %v626_v33 = vrot.slane %v612_v25, %v2124_v52  ;;  %v2154_v34 = vpop.permute.xlu1 %1021 }
 0x2e1   : > { %v945_v35 = vcombine.low %v921_v26, %v937_v28  ;;  %v946_v36 = vcombine.high %v921_v26, %v937_v28  ;;  %v947_v37 = vcombine.low %v928_v27, %v944_v29  ;;  %v948_v38 = vcombine.high %v928_v27, %v944_v29 }
 0x2e2   : > { %v627_v39 = vcombine.low %v603_v30, %v619_v32  ;;  %v628_v40 = vcombine.high %v603_v30, %v619_v32  ;;  %v643_v42 = vcombine.low %v610_v31, %v626_v33  ;;  %v644_v43 = vcombine.high %v610_v31, %v626_v33 }
 0x2e3   : > { %v949_v44 = vpack.c.bf16 %v945_v35, %v945_v35  ;;  %v950_v45 = vpack.c.bf16 %v946_v36, %v946_v36  ;;  %v951_v46 = vpack.c.bf16 %v947_v37, %v947_v37  ;;  %v952_v47 = vpack.c.bf16 %v948_v38, %v948_v38 }
 0x2e4   : > { %v635_v48 = vrot.slane %v627_v39, %v2126_v58  ;;  %v642_v49 = vrot.slane %v628_v40, %v2126_v58  ;;  %v651_v50 = vrot.slane %v643_v42, %v2126_v58  ;;  %v658_v51 = vrot.slane %v644_v43, %v2126_v58  ;;  %v1025_v53 = vpop.permute.xlu1 %1024 }
 0x2e5   : > { %953 = vst.msk [vmem:[%s477_s11] sm:$0xf] %vm735_vm2, %v949_v44  ;;  %954 = vst.msk [vmem:[%s477_s11 + $0x4] sm:$0xf] %vm735_vm2, %v950_v45 }
 0x2e6   : > { %955 = vst.msk [vmem:[%s477_s11 + $0x8] sm:$0xf] %vm735_vm2, %v951_v46  ;;  %956 = vst.msk [vmem:[%s477_s11 + $0xc] sm:$0xf] %vm735_vm2, %v952_v47  ;;  %v663_v54 = vcombine.low %v635_v48, %v642_v49  ;;  %v1434_v55 = vcombine.high %v635_v48, %v642_v49  ;;  %v679_v56 = vcombine.low %v651_v50, %v658_v51 }
 0x2e7   : > { %v1435_v57 = vcombine.high %v651_v50, %v658_v51 }
 0x2e8   : > { %1736 = shalt.err (!%p1733_p12)
}
 0x2e9   : > { %s1737_s23 = scalar_lea.hbm %s2164_s20, 256  ;;  %s1741_s5 = scalar_lea.hbm %s2341_s10, 512 }
 0x2ea   : > { %p1738_p0 = scmp.ne.s32.totalorder %s2164_s20, %s1737_s23  ;;  %p1742_p7 = scmp.lt.s32.totalorder %s2164_s20, %s2341_s10 }
 0x2eb   : > { %p1743_p8 = scmp.lt.s32.totalorder %s1741_s5, %s1737_s23 }
 0x2ec   : > { %p1739_p3 = pnand %p1738_p0, %p2045_p5 }
 0x2ed   : > { %p1744_p11 = por %p1743_p8, %p1742_p7 }
 0x2ee   : > { %p1740_p10 = pneg %p1739_p3 }
 0x2f0   : > { %p1745_p1 = pnand %p1744_p11, %p1740_p10 }
 0x2f2   : > { %1748 = shalt.err (!%p1745_p1)
}
 0x2f3   : > { %s1883_s13 = smov 64   ;;  %s1884_s29 = smov 4   ;;  %v1030_v59 = vcombine.low %v2119_v41, %v1025_v53  ;;  %v1031_v60 = vcombine.high %v2119_v41, %v1025_v53  ;;  %v670_v61 = vrot.slane %v663_v54, %v2124_v52  ;;  %v678_v62 = vrot.slane %v1434_v55, %v2124_v52  ;;  %v1028_v1 = vpop.permute.xlu1 %1027 }
 0x2f4   : > { %1510 = dma.vmem_to_hbm [thread:$0]  (%p2045_p5), %s2166_s25, 256, %s2164_s20, %s2178_s26, %s1883_s13, %s1883_s13, %s1884_s29   ;;  %v686_v63 = vrot.slane %v679_v56, %v2124_v52  ;;  %v694_v0 = vrot.slane %v1435_v57, %v2124_v52  ;;  %v1046_v2 = vcombine.low %v2154_v34, %v1028_v1  ;;  %v1047_v3 = vcombine.high %v2154_v34, %v1028_v1 }
 0x2f5   : > { %v695_v4 = vcombine.low %v670_v61, %v678_v62  ;;  %v696_v5 = vcombine.high %v670_v61, %v678_v62  ;;  %v1038_v41 = vrot.slane %v1030_v59, %v2124_v52  ;;  %v1045_v8 = vrot.slane %v1031_v60, %v2124_v52  ;;  %s470_s25 = scalar_lea.vmem [#allocation10], %s2143_s24  ;;  %s2229_s28 = scalar_lea.hbm %s2340_s9, %s2157_s7 }
 0x2f6   : > { %v711_v6 = vcombine.low %v686_v63, %v694_v0  ;;  %v712_v7 = vcombine.high %v686_v63, %v694_v0  ;;  %v1054_v9 = vrot.slane %v1046_v2, %v2124_v52  ;;  %v1061_v10 = vrot.slane %v1047_v3, %v2124_v52  ;;  %s1199_s20 = sshll.u32 %s470_s25, 4  ;;  %s1175_s23 = scalar_lea.sflag [#allocation4], %s2075_s3  ;;  %s2231_s20 = int_to_ptr.vmem [resolvable:$true] %s1199_s20 }
 0x2f7   : > { %v703_v11 = vrot.slane %v695_v4, %v2126_v58  ;;  %v710_v12 = vrot.slane %v696_v5, %v2126_v58  ;;  %s1749_s14 = scalar_lea.vmem %s2231_s20, 256  ;;  %s1885_s15 = smov [#allocation10]  }
 0x2f8   : > { %v719_v13 = vrot.slane %v711_v6, %v2126_v58  ;;  %v726_v14 = vrot.slane %v712_v7, %v2126_v58  ;;  %v1062_v15 = vcombine.low %v1038_v41, %v1054_v9  ;;  %v1063_v16 = vcombine.high %v1038_v41, %v1054_v9  ;;  %p1750_p9 = scmp.ne.s32.totalorder %s2231_s20, %s1749_s14  ;;  %s1753_s5 = sshll.u32 %s1885_s15, 4  ;;  %s1754_s5 = int_to_ptr.vmem [resolvable:$false] %s1753_s5 }
 0x2f9   : > { %v1078_v17 = vcombine.low %v1045_v8, %v1061_v10  ;;  %v1079_v18 = vcombine.high %v1045_v8, %v1061_v10  ;;  %s1755_s11 = scalar_lea.vmem %s1754_s5, 512  ;;  %p1756_p4 = scmp.lt.s32.totalorder %s2231_s20, %s1754_s5 }
 0x2fa   : > { %v727_v19 = vcombine.low %v703_v11, %v719_v13  ;;  %v728_v20 = vcombine.high %v703_v11, %v719_v13  ;;  %v729_v21 = vcombine.low %v710_v12, %v726_v14  ;;  %v730_v22 = vcombine.high %v710_v12, %v726_v14  ;;  %p1751_p13 = pnand %p1750_p9, %p2045_p5  ;;  %p1757_p6 = scmp.lt.s32.totalorder %s1755_s11, %s1749_s14 }
 0x2fb   : > { %v1070_v23 = vrot.slane %v1062_v15, %v2126_v58  ;;  %v1077_v24 = vrot.slane %v1063_v16, %v2126_v58  ;;  %v1086_v25 = vrot.slane %v1078_v17, %v2126_v58  ;;  %v1093_v26 = vrot.slane %v1079_v18, %v2126_v58 }
 0x2fc   : > { %v731_v27 = vpack.c.bf16 %v727_v19, %v727_v19  ;;  %v732_v28 = vpack.c.bf16 %v728_v20, %v728_v20  ;;  %v733_v29 = vpack.c.bf16 %v729_v21, %v729_v21  ;;  %v734_v30 = vpack.c.bf16 %v730_v22, %v730_v22  ;;  %p1752_p2 = pneg %p1751_p13  ;;  %p1758_p12 = por %p1757_p6, %p1756_p4 }
 0x2fd   : > { %v1098_v31 = vcombine.low %v1070_v23, %v1077_v24  ;;  %v1446_v32 = vcombine.high %v1070_v23, %v1077_v24  ;;  %v1114_v33 = vcombine.low %v1086_v25, %v1093_v26  ;;  %v1447_v34 = vcombine.high %v1086_v25, %v1093_v26 }
 0x2fe   : > { %736 = vst.msk [vmem:[%s470_s25] sm:$0xf] %vm735_vm2, %v731_v27  ;;  %737 = vst.msk [vmem:[%s470_s25 + $0x4] sm:$0xf] %vm735_vm2, %v732_v28  ;;  %p1759_p0 = pnand %p1758_p12, %p1752_p2 }
 0x2ff   : > { %738 = vst.msk [vmem:[%s470_s25 + $0x8] sm:$0xf] %vm735_vm2, %v733_v29  ;;  %739 = vst.msk [vmem:[%s470_s25 + $0xc] sm:$0xf] %vm735_vm2, %v734_v30  ;;  %v1105_v35 = vrot.slane %v1098_v31, %v2124_v52  ;;  %v1113_v36 = vrot.slane %v1446_v32, %v2124_v52  ;;  %v1121_v37 = vrot.slane %v1114_v33, %v2124_v52 }
 0x300   : > { %v1129_v38 = vrot.slane %v1447_v34, %v2124_v52 }
 0x301   : > { %1762 = shalt.err (!%p1759_p0)
}
 0x302   : > { %s1763_s27 = scalar_lea.hbm %s2229_s28, 256  ;;  %s1767_s16 = scalar_lea.hbm %s2340_s9, 512 }
 0x303   : > { %p1764_p3 = scmp.ne.s32.totalorder %s2229_s28, %s1763_s27  ;;  %p1768_p8 = scmp.lt.s32.totalorder %s2229_s28, %s2340_s9 }
 0x304   : > { %p1769_p11 = scmp.lt.s32.totalorder %s1767_s16, %s1763_s27 }
 0x305   : > { %p1765_p10 = pnand %p1764_p3, %p2045_p5 }
 0x306   : > { %p1770_p1 = por %p1769_p11, %p1768_p8 }
 0x307   : > { %p1766_p7 = pneg %p1765_p10 }
 0x309   : > { %p1771_p9 = pnand %p1770_p1, %p1766_p7 }
 0x30b   : > { %1774 = shalt.err (!%p1771_p9)
}
 0x30c   : > { %1509 = dma.vmem_to_hbm [thread:$0]  (%p2045_p5), %s2231_s20, 256, %s2229_s28, %s1175_s23, %s1883_s13, %s1883_s13, %s1884_s29   ;;  %v1130_v52 = vcombine.low %v1105_v35, %v1113_v36  ;;  %v1131_v39 = vcombine.high %v1105_v35, %v1113_v36  ;;  %v1146_v40 = vcombine.low %v1121_v37, %v1129_v38  ;;  %v1147_v42 = vcombine.high %v1121_v37, %v1129_v38 }
 0x30d   : > { %s484_s14 = scalar_lea.vmem [#allocation13], %s2143_s24  ;;  %s2372_s23 = sld [smem:[#allocation25_spill]] }
 0x30e   : > { %v1138_v43 = vrot.slane %v1130_v52, %v2126_v58  ;;  %v1145_v44 = vrot.slane %v1131_v39, %v2126_v58  ;;  %v1154_v45 = vrot.slane %v1146_v40, %v2126_v58  ;;  %v1161_v46 = vrot.slane %v1147_v42, %v2126_v58  ;;  %s1233_s5 = sshll.u32 %s484_s14, 4  ;;  %s2276_s5 = int_to_ptr.vmem [resolvable:$true] %s1233_s5 }
 0x30f   : > { %s1775_s24 = scalar_lea.vmem %s2276_s5, 256 }
 0x310   : > { %v1162_v47 = vcombine.low %v1138_v43, %v1154_v45  ;;  %v1163_v48 = vcombine.high %v1138_v43, %v1154_v45  ;;  %v1164_v49 = vcombine.low %v1145_v44, %v1161_v46  ;;  %v1165_v50 = vcombine.high %v1145_v44, %v1161_v46  ;;  %p1776_p13 = scmp.ne.s32.totalorder %s2276_s5, %s1775_s24 }
 0x312   : > { %v1166_v51 = vpack.c.bf16 %v1162_v47, %v1162_v47  ;;  %v1167_v53 = vpack.c.bf16 %v1163_v48, %v1163_v48  ;;  %v1168_v54 = vpack.c.bf16 %v1164_v49, %v1164_v49  ;;  %v1169_v55 = vpack.c.bf16 %v1165_v50, %v1165_v50  ;;  %p1777_p2 = pnand %p1776_p13, %p2045_p5 }
 0x313   : > { %s2274_s11 = scalar_lea.hbm %s2372_s23, %s2157_s7  ;;  %s1886_s7 = smov [#allocation13]  }
 0x314   : > { %1170 = vst.msk [vmem:[%s484_s14] sm:$0xf] %vm735_vm2, %v1166_v51  ;;  %1171 = vst.msk [vmem:[%s484_s14 + $0x4] sm:$0xf] %vm735_vm2, %v1167_v53  ;;  %p1778_p4 = pneg %p1777_p2  ;;  %s1779_s27 = sshll.u32 %s1886_s7, 4  ;;  %s1780_s27 = int_to_ptr.vmem [resolvable:$false] %s1779_s27 }
 0x315   : > { %1172 = vst.msk [vmem:[%s484_s14 + $0x8] sm:$0xf] %vm735_vm2, %v1168_v54  ;;  %1173 = vst.msk [vmem:[%s484_s14 + $0xc] sm:$0xf] %vm735_vm2, %v1169_v55  ;;  %s1781_s3 = scalar_lea.vmem %s1780_s27, 512  ;;  %p1782_p6 = scmp.lt.s32.totalorder %s2276_s5, %s1780_s27 }
 0x316   : > { %p1783_p12 = scmp.lt.s32.totalorder %s1781_s3, %s1775_s24 }
 0x318   : > { %p1784_p0 = por %p1783_p12, %p1782_p6 }
 0x31a   : > { %p1785_p3 = pnand %p1784_p0, %p1778_p4 }
 0x31c   : > { %1788 = shalt.err (!%p1785_p3)
}
 0x31d   : > { %s1789_s25 = scalar_lea.hbm %s2274_s11, 256  ;;  %s1793_s15 = scalar_lea.hbm %s2372_s23, 512 }
 0x31e   : > { %p1790_p10 = scmp.ne.s32.totalorder %s2274_s11, %s1789_s25  ;;  %p1794_p11 = scmp.lt.s32.totalorder %s2274_s11, %s2372_s23 }
 0x31f   : > { %p1795_p1 = scmp.lt.s32.totalorder %s1793_s15, %s1789_s25 }
 0x320   : > { %p1791_p7 = pnand %p1790_p10, %p2045_p5 }
 0x321   : > { %p1796_p9 = por %p1795_p1, %p1794_p11 }
 0x322   : > { %p1792_p8 = pneg %p1791_p7 }
 0x324   : > { %p1797_p13 = pnand %p1796_p9, %p1792_p8 }
 0x326   : > { %1800 = shalt.err (!%p1797_p13)
}
 0x327   : > { %1511 = dma.vmem_to_hbm [thread:$0]  (%p2045_p5), %s2276_s5, 256, %s2274_s11, %s2178_s26, %s1883_s13, %s1883_s13, %s1884_s29  }
 0x328 PF: > { %s2373_s28 = sld [smem:[#allocation19_spill]]  ;;  %p2376_p4 = scmp.ge.s32.totalorder %s1867_s22, 2 }
 0x329   : > { %s2374_s24 = sld [smem:[#allocation20_spill]] }
 0x32e   : > { %s1248_s7 = sand.u32 1, %s2373_s28  }
 0x32f   : > { %p2375_p2 = scmp.ne.s32.totalorder %s2374_s24, 0  ;;  %s1249_s27 = scalar_lea.sflag [#allocation4], %s1248_s7 }
 0x331   : > { %p1530_p6 = pnand %p2376_p4, %p2375_p2 }
 0x333   : > { %p1531_p12 = pneg %p1530_p6 }
 0x335   : > { %1838 = dma.done.wait (%p1531_p12), %s1249_s27, 256  }
 0x336   : > { %1840 = vsyncadd (%p1531_p12), %s1249_s27, 4294967040  ;;  %s2377_s30 = sadd.s32 4294967294, %s1867_s22  }
 0x337   : > { %s1257_s3 = sand.u32 1, %s2377_s30  }
 0x338   : > { %s1258_s25 = scalar_lea.sflag [#allocation12], %s1257_s3 }
 0x339   : > { %1842 = dma.done.wait (%p1531_p12), %s1258_s25, 512  }
 0x33a   : > { %1844 = vsyncadd (%p1531_p12), %s1258_s25, 4294966784  ;;  %s33_s22 = sadd.s32 1, %s1867_s22   ;;  %s2378_s26 = sld [smem:[#allocation21_spill]] }
 0x33b   : > { %p30_p5 = scmp.ge.s32.totalorder %s33_s22, 4   ;;  %s2379_s17 = smov %s1851_s18 }
 0x33c   : > { %s2380_s18 = smov %s1855_s19  ;;  %s2381_s19 = smov %s2057_s12 }
 0x33d   : > { %s2382_s20 = smov %s1863_s21  ;;  %32 = sbr.rel (!%p30_p5) target bundleno = 15 (0xf), region = 145 }
 0x340   : > { %s2383_s21 = smov %s2378_s26 }
 0x342   :  { %1272 = vsyncpa [#allocation3], 1 }
 0x343   :  { %1274 = vsyncpa [#allocation3 + $0x1], 1 }
 0x344   :  { %1275 = vsyncpa [#allocation6], 1 }
 0x345   :  { %1276 = vsyncpa [#allocation9], 1 }
 0x346   :  { %1277 = vsyncpa [#allocation4], 1 }
 0x347   :  { %1279 = vsyncpa [#allocation4 + $0x1], 1 }
 0x348   :  { %1280 = vsyncpa [#allocation12], 1 }
 0x349   :  { %1282 = vsyncpa [#allocation12 + $0x1], 1 }

</bundles_post_ra>
